<compile_context>
chip_gen: v7x
topology: tpu7x:2x2x1
jax: 0.10.0
libtpu: 0.0.40
codegen_flags: <defaults>
</compile_context>

<pallas_src>
import functools

import jax
import jax.numpy as jnp
from jax import lax
from jax.experimental import pallas as pl
from jax.experimental.pallas import tpu as pltpu


def _round_up(x, m):
    return ((x + m - 1) // m) * m


def _sublane_align(dtype):
    # Minimum sublane tile: 8 for 4-byte, 16 for 2-byte, 32 for 1-byte dtypes.
    return max(8, 32 // jnp.dtype(dtype).itemsize)


def _pick_tile_m(M, tile_m, align):
    """Row tile: a multiple of `align`; prefers one that divides M exactly
    (so the lhs never needs an HBM padding pass) and that yields >= 2 grid
    steps (v7x's two TensorCores split the 'parallel' axis)."""
    tile_m = max(align, (tile_m // align) * align)
    if M <= align:
        return align
    t = min(tile_m, (M // align) * align)
    best_div = 0
    while t >= align:
        if M % t == 0:
            best_div = t
            break
        t -= align
    if best_div:
        if best_div == M and (M // 2) % align == 0:
            return M // 2              # split into 2 steps for dual-TC chips
        return best_div
    return min(tile_m, _round_up(M, align))   # ragged M: fall back to padding


# ---------------------------------------------------------------------------
# Kernels
# ---------------------------------------------------------------------------
def _matmul_bias_kernel(x_ref, w_ref, b_ref, o_ref):
    # x_ref: (TM, K) native dtype   | w_ref: (K, TN) native dtype
    # b_ref: (1, TN) float32        | o_ref: (TM, TN) native dtype
    acc = jnp.dot(x_ref[...], w_ref[...], preferred_element_type=jnp.float32)
    o_ref[...] = (acc + b_ref[...]).astype(o_ref.dtype)


def _conv_taps_kernel(x_ref, w_ref, b_ref, o_ref, *, kh, kw, stride, dilation,
                      ho, wo):
    # x_ref: (1, Hp, Wp, Cin) padded NHWC image (native dtype)
    # w_ref: (kh*kw, Cin, TN) per-tap weights    (native dtype)
    # b_ref: (1, TN) float32 bias row
    # o_ref: (1, ho, wo, TN) output tile         (native dtype)
    tn = o_ref.shape[-1]
    span = (wo - 1) * stride + 1

    def row_body(i, carry):
        acc = jnp.zeros((wo, tn), jnp.float32)
        for t in range(kh * kw):                       # static tap unroll
            dy, dx = divmod(t, kw)
            row = x_ref[0, i * stride + dy * dilation]          # (Wp, Cin)
            win = row[dx * dilation:dx * dilation + span:stride, :]  # (wo, Cin)
            acc = acc + jnp.dot(win, w_ref[t],
                                preferred_element_type=jnp.float32)
        o_ref[0, i] = (acc + b_ref[...]).astype(o_ref.dtype)
        return carry

    lax.fori_loop(0, ho, row_body, 0)


# ---------------------------------------------------------------------------
# Wrapper
# ---------------------------------------------------------------------------
def conv1_forward(x_nchw, weight, bias=None, *, stride=1, padding=0,
                  dilation=1, groups=1, tile_m=512, tile_n=256,
                  channels_last_out=False):
    """Pallas forward of Conv1 (nn.Conv2d).  NCHW in, NCHW out
    (or NHWC out if channels_last_out=True, skipping the final transpose).

    weight: (Cout, Cin, kH, kW) (PyTorch OIHW layout); bias: (Cout,) or None.
    """
    if groups != 1:
        # TODO(synk): grouped convolution (groups != 1) not implemented.
        raise NotImplementedError("groups != 1 not supported")

    N, Cin, H, W = x_nchw.shape
    Cout, Cin_w, kH, kW = weight.shape
    assert Cin_w == Cin
    dtype = x_nchw.dtype
    isz = jnp.dtype(dtype).itemsize

    Ho = (H + 2 * padding - dilation * (kH - 1) - 1) // stride + 1
    Wo = (W + 2 * padding - dilation * (kW - 1) - 1) // stride + 1

    # Lane-dense output channels, tiled by TN (multiple of 128).
    CoutP = _round_up(Cout, 128)
    TN = min(_round_up(tile_n, 128), CoutP)
    while CoutP % TN:
        TN -= 128

    # Weight OIHW -> (kH, kW, Cin, Cout) in the input dtype; bias as f32 row.
    w_hwio = jnp.transpose(weight, (2, 3, 1, 0)).astype(dtype)
    b_vec = bias if bias is not None else jnp.zeros((Cout,), jnp.float32)
    b_row = jnp.pad(b_vec.astype(jnp.float32).reshape(1, Cout),
                    ((0, 0), (0, CoutP - Cout)))

    # NHWC input, spatially padded once (no im2col blow-up in HBM).
    x_nhwc = jnp.transpose(x_nchw, (0, 2, 3, 1))
    if padding > 0:
        x_nhwc = jnp.pad(x_nhwc, ((0, 0), (padding, padding),
                                  (padding, padding), (0, 0)))

    if kH == 1 and kW == 1:
        # ---- 1x1 conv (module default): one fat lane-dense matmul --------
        if stride > 1:
            x_nhwc = x_nhwc[:, 0:(Ho - 1) * stride + 1:stride,
                            0:(Wo - 1) * stride + 1:stride, :]
        M = N * Ho * Wo
        K = Cin
        lhs = x_nhwc.reshape(M, K)

        align = _sublane_align(dtype)
        TM = _pick_tile_m(M, tile_m, align)
        MP = _round_up(M, TM)
        if MP != M:
            lhs = jnp.pad(lhs, ((0, MP - M), (0, 0)))

        w_mat = jnp.pad(w_hwio.reshape(K, Cout), ((0, 0), (0, CoutP - Cout)))

        grid = (MP // TM, CoutP // TN)
        # Explicit per-step VMEM budget (double-buffered in/out) + headroom;
        # never below the 32 MiB scoped default, capped at v7x's 64 MiB.
        need = 2 * (TM * K + K * TN + TM * TN) * isz + 2 * TN * 4
        vmem_limit = int(min(64 << 20, max(32 << 20, 2 * need + (2 << 20))))

        flops = 2 * M * K * Cout + M * Cout
        bytes_accessed = (M * K + K * CoutP + M * CoutP) * isz + CoutP * 4

        out = pl.pallas_call(
            _matmul_bias_kernel,
            out_shape=jax.ShapeDtypeStruct((MP, CoutP), dtype),
            grid_spec=pltpu.PrefetchScalarGridSpec(
                num_scalar_prefetch=0,
                grid=grid,
                # NOTE: the weight/bias index maps are constant in i, so the
                # same block stays resident across the M axis.
                # pipeline_mode=pl.Buffered(1) on these specs would also
                # halve their VMEM footprint (v7x headroom); left at the
                # default for portability across JAX versions.
                in_specs=[pl.BlockSpec((TM, K), lambda i, j: (i, 0)),
                          pl.BlockSpec((K, TN), lambda i, j: (0, j)),
                          pl.BlockSpec((1, TN), lambda i, j: (0, j))],
                out_specs=pl.BlockSpec((TM, TN), lambda i, j: (i, j)),
            ),
            compiler_params=pltpu.CompilerParams(
                dimension_semantics=("parallel", "parallel"),
                vmem_limit_bytes=vmem_limit),
            cost_estimate=pl.CostEstimate(flops=flops, transcendentals=0,
                                          bytes_accessed=bytes_accessed),
        )(lhs, w_mat, b_row)
        # TODO(synk): add a K ('arbitrary') reduction axis with an f32 VMEM
        # accumulator for very large Cin (K = Cin is tiny for 1x1, HBM-bound).

        out = out[:M, :Cout].reshape(N, Ho, Wo, Cout)
    else:
        # ---- general kHxkW: per-tap accumulation inside the kernel -------
        Hp, Wp = H + 2 * padding, W + 2 * padding
        taps = kH * kW
        K = taps * Cin
        w_taps = jnp.pad(w_hwio.reshape(taps, Cin, Cout),
                         ((0, 0), (0, 0), (0, CoutP - Cout)))

        grid = (N, CoutP // TN)
        need = (2 * (Hp * Wp * Cin + taps * Cin * TN + Ho * Wo * TN) * isz
                + 2 * TN * 4)
        vmem_limit = int(min(64 << 20, max(32 << 20, 2 * need + (2 << 20))))

        M = N * Ho * Wo
        flops = 2 * M * K * Cout + M * Cout
        bytes_accessed = (N * Hp * Wp * Cin + K * CoutP + M * CoutP) * isz \
            + CoutP * 4

        kern = functools.partial(_conv_taps_kernel, kh=kH, kw=kW,
                                 stride=stride, dilation=dilation,
                                 ho=Ho, wo=Wo)
        out = pl.pallas_call(
            kern,
            out_shape=jax.ShapeDtypeStruct((N, Ho, Wo, CoutP), dtype),
            grid_spec=pltpu.PrefetchScalarGridSpec(
                num_scalar_prefetch=0,
                grid=grid,
                in_specs=[pl.BlockSpec((1, Hp, Wp, Cin),
                                       lambda n, j: (n, 0, 0, 0)),
                          pl.BlockSpec((taps, Cin, TN),
                                       lambda n, j: (0, 0, j)),
                          pl.BlockSpec((1, TN), lambda n, j: (0, j))],
                out_specs=pl.BlockSpec((1, Ho, Wo, TN),
                                       lambda n, j: (n, 0, 0, j)),
            ),
            compiler_params=pltpu.CompilerParams(
                dimension_semantics=("parallel", "parallel"),
                vmem_limit_bytes=vmem_limit),
            cost_estimate=pl.CostEstimate(flops=flops, transcendentals=0,
                                          bytes_accessed=bytes_accessed),
        )(x_nhwc, w_taps, b_row)
        # TODO(synk): for large images, tile Ho with a row halo per grid step
        # instead of keeping the whole padded image resident in VMEM.

        out = out[:, :, :, :Cout]

    if channels_last_out:
        return out                       # (N, Ho, Wo, Cout)
    return jnp.transpose(out, (0, 3, 1, 2))


def conv1_reference(x_nchw, weight, bias, *, stride=1, padding=0, dilation=1):
    """Pure-JAX reference (lax conv) for correctness checking."""
    y = lax.conv_general_dilated(
        x_nchw, weight,
        window_strides=(stride, stride),
        padding=[(padding, padding), (padding, padding)],
        rhs_dilation=(dilation, dilation),
        dimension_numbers=('NCHW', 'OIHW', 'NCHW'))
    if bias is not None:
        y = y + bias[None, :, None, None]
    return y


if __name__ == "__main__":
    key = jax.random.PRNGKey(0)
    k0, k1, k2, k3, k4 = jax.random.split(key, 5)

    N, Cin, Cout, H, W = 2, 4, 8, 16, 16
    x = jax.random.normal(k0, (N, Cin, H, W), jnp.float32)

    # ---- module defaults: kernel_size=1, padding=0, stride=1 -------------
    w1 = 0.1 * jax.random.normal(k1, (Cout, Cin, 1, 1), jnp.float32)
    b1 = 0.1 * jax.random.normal(k2, (Cout,), jnp.float32)
    out1 = jax.block_until_ready(conv1_forward(x, w1, b1))
    ref1 = jax.block_until_ready(conv1_reference(x, w1, b1))
    assert out1.shape == (N, Cout, H, W) and out1.dtype == x.dtype
    assert jnp.allclose(out1, ref1, rtol=1e-4, atol=1e-4), \
        "mismatch vs reference (1x1 conv, f32)"

    # ---- native bf16 path (no forced f32 casts; f32 MXU accumulation) ----
    out1b = jax.block_until_ready(
        conv1_forward(x.astype(jnp.bfloat16), w1.astype(jnp.bfloat16),
                      b1.astype(jnp.bfloat16)))
    assert out1b.dtype == jnp.bfloat16
    assert jnp.allclose(out1b.astype(jnp.float32), ref1,
                        rtol=5e-2, atol=5e-2), \
        "mismatch vs reference (1x1 conv, bf16)"

    # ---- parametrized case: kernel_size=3, padding=1 ----------------------
    w3 = 0.1 * jax.random.normal(k3, (Cout, Cin, 3, 3), jnp.float32)
    b3 = 0.1 * jax.random.normal(k4, (Cout,), jnp.float32)
    out3 = jax.block_until_ready(conv1_forward(x, w3, b3, padding=1))
    ref3 = jax.block_until_ready(conv1_reference(x, w3, b3, padding=1))
    assert out3.shape == (N, Cout, H, W)
    assert jnp.allclose(out3, ref3, rtol=1e-4, atol=1e-4), \
        "mismatch vs reference (3x3 conv)"

    print("KERNEL_OK")
</pallas_src>

<mosaic_0001>
module attributes {stable_mosaic.version = 11 : i64} {
  func.func @_matmul_bias_kernel(%arg0: i32, %arg1: i32, %arg2: memref<256x4xf32, #tpu.memory_space<vmem>>, %arg3: memref<4x128xf32, #tpu.memory_space<vmem>>, %arg4: memref<1x128xf32, #tpu.memory_space<vmem>>, %arg5: memref<256x128xf32, #tpu.memory_space<vmem>>) attributes {dimension_semantics = [#tpu.dimension_semantics<parallel>, #tpu.dimension_semantics<parallel>], iteration_bounds = array<i64: 2, 1>, scalar_prefetch = 0 : i64, scratch_operands = 0 : i64, tpu.core_type = #tpu.core_type<tc>, window_params = [{transform_indices = @transform_0, window_bounds = array<i64: 256, 4>}, {transform_indices = @transform_1, window_bounds = array<i64: 4, 128>}, {transform_indices = @transform_2, window_bounds = array<i64: 1, 128>}, {transform_indices = @transform_3, window_bounds = array<i64: 256, 128>}]} {
    %c0 = arith.constant 0 : index
    %c0_0 = arith.constant 0 : index
    %0 = vector.load %arg2[%c0, %c0_0] : memref<256x4xf32, #tpu.memory_space<vmem>>, vector<256x4xf32>
    %c0_1 = arith.constant 0 : index
    %c0_2 = arith.constant 0 : index
    %1 = vector.load %arg3[%c0_1, %c0_2] : memref<4x128xf32, #tpu.memory_space<vmem>>, vector<4x128xf32>
    %cst = arith.constant dense<0.000000e+00> : vector<256x128xf32>
    %2 = tpu.matmul %0, %1, %cst {dimension_numbers = #tpu.dot_dimension_numbers<[1], [0], [0], [1], [0, 0, 1, 1], [], []>} : vector<256x4xf32>, vector<4x128xf32>, vector<256x128xf32> -> vector<256x128xf32>
    %c0_3 = arith.constant 0 : index
    %c0_4 = arith.constant 0 : index
    %3 = vector.load %arg4[%c0_3, %c0_4] : memref<1x128xf32, #tpu.memory_space<vmem>>, vector<1x128xf32>
    %4 = vector.broadcast %3 : vector<1x128xf32> to vector<256x128xf32>
    %5 = arith.addf %2, %4 : vector<256x128xf32>
    %c0_5 = arith.constant 0 : index
    %c0_6 = arith.constant 0 : index
    %6 = vector.load %arg5[%c0_5, %c0_6] : memref<256x128xf32, #tpu.memory_space<vmem>>, vector<256x128xf32>
    tpu.vector_store %arg5[%c0_5, %c0_6], %5 {strides = array<i32>} : memref<256x128xf32, #tpu.memory_space<vmem>>, vector<256x128xf32>,
    return
  }
  func.func @transform_0(%arg0: i32, %arg1: i32) -> (i32, i32) {
    %c0_i32 = arith.constant 0 : i32
    %c0_i32_0 = arith.constant 0 : i32
    return %arg0, %c0_i32 : i32, i32
  }
  func.func @transform_1(%arg0: i32, %arg1: i32) -> (i32, i32) {
    %c0_i32 = arith.constant 0 : i32
    %c0_i32_0 = arith.constant 0 : i32
    return %c0_i32, %arg1 : i32, i32
  }
  func.func @transform_2(%arg0: i32, %arg1: i32) -> (i32, i32) {
    %c0_i32 = arith.constant 0 : i32
    %c0_i32_0 = arith.constant 0 : i32
    return %c0_i32, %arg1 : i32, i32
  }
  func.func @transform_3(%arg0: i32, %arg1: i32) -> (i32, i32) {
    %c0_i32 = arith.constant 0 : i32
    return %arg0, %arg1 : i32, i32
  }
}

</mosaic_0001>

<bundles_post_ra>
// kernel: tpu_custom_call.1
= control target key start
LH: loop header
LB: loop body
LE: loop exit
PB: predicated region body
PF: predicated region fallthrough
CT: control target
= control target key end

     0   :  { %8 = vsyncpa [#allocation3], 0  ;;  %s1283_s0 = inlined_call_operand.vmem [shape: f32[512,4], index: 0, kind: input, shape index: {}]   ;;  %s1284_s1 = inlined_call_operand.vmem [shape: f32[4,128], index: 1, kind: input, shape index: {}]   ;;  %s1285_s2 = inlined_call_operand.vmem [shape: f32[1,128], index: 2, kind: input, shape index: {}]   ;;  %s1286_s3 = inlined_call_operand.hbm [shape: f32[512,128], index: 3, kind: output, shape index: {}]  }
   0x1   :  { %10 = vsyncpa [#allocation3 + $0x1], 0  ;;  %s1024_s12 = smov 0   ;;  %s1026_s13 = smov 0  }
   0x2   :  { %s1028_s14 = smov 0   ;;  %s1030_s15 = smov 0  }
   0x3   :  { %s1032_s16 = smov 0   ;;  %s1034_s17 = smov 0  }
   0x4 LB: > { %s729_s18 = sadd.s32 4294967295, %s999_s17   ;;  %s730_s19 = sadd.s32 4294967294, %s999_s17   ;;  %s999_s17 = sphi %s1034_s17, %s16_s17   ;;  %s995_s16 = sphi %s1032_s16, %s1293_s16   ;;  %s991_s15 = sphi %s1030_s15, %s1292_s15   ;;  %s987_s14 = sphi %s1028_s14, %s1291_s14   ;;  %s983_s13 = sphi %s1026_s13, %s1290_s13   ;;  %s979_s12 = sphi %s1024_s12, %s1289_s12  }
   0x5   : > { %s28_s20 = sadd.s32 1, %s995_s16  ;;  %s115_s21 = sadd.s32 1, %s987_s14 }
   0x6   : > { %p30_p0 = scmp.ge.s32.totalorder %s28_s20, 2  ;;  %p125_p1 = scmp.ne.s32.totalorder %s987_s14, %s983_s13 }
   0x7   : > { %p126_p2 = scmp.eq.s32.totalorder %s729_s18, 1  ;;  %p131_p3 = scmp.ne.s32.totalorder %s983_s13, %s979_s12 }
   0x8   : > { %s1295_s20 = smov (%p30_p0, %s28_s20), 0  ;;  %p132_p5 = scmp.eq.s32.totalorder %s730_s19, 1 }
   0x9   : > { %p1064_p4 = por %p126_p2, %p125_p1  ;;  %s110_s23 = ssub.s32 %s995_s16, %s1295_s20 }
   0xa   : > { %p735_p6 = scmp.ge.s32.totalorder %s999_s17, 1  ;;  %p113_p7 = scmp.eq.s32.totalorder %s110_s23, 0 }
   0xb   : > { %p1071_p8 = por %p132_p5, %p131_p3  ;;  %p172_p9 = scmp.lt.s32.totalorder %s999_s17, 3 }
   0xc   : > { %s1077_s25 = scalar_select %p113_p7, %s987_s14, %s115_s21  }
   0xd   : > { %p173_p10 = pnand %p735_p6, %p172_p9 }
   0xe   : > { %v249_v0 = vld [vmem:[%s1284_s1] sm:$0xf] (!%p173_p10)  ;;  %vm354_vm0 = vcmask (!%p173_p10), 1043456   ;;  %s737_s28 = sshll.u32 (!%p173_p10), %s991_s15, 5  ;;  %vm257_vm1 = vcmask (!%p173_p10), 31744   ;;  %s200_s6 = sand.u32 (!%p173_p10), 1, %s983_s13  }
   0xf   : > { %176 = sbr.rel (%p173_p10) target bundleno = 286 (0x11e), region = 32  ;;  %812 = vmatprep.subr.msk.mxu0 (!%p173_p10), %vm354_vm0, %v249_v0  ;;  %862 = vmatprep.subr.msk.mxu1 (!%p173_p10), %vm354_vm0, %v249_v0  ;;  %p204_p11 = scmp.lt.s32.totalorder (!%p173_p10), %s737_s28, 63  ;;  %v1158_v33 = vld [vmem:[%s1285_s2] ss:$0 sm:$0xff] (!%p173_p10) }
  0x10   : > { %813 = vmatpush3.msk.msra.mxu0 (!%p173_p10), %vm354_vm0, %v249_v0  ;;  %863 = vmatpush3.msk.msra.mxu1 (!%p173_p10), %vm354_vm0, %v249_v0  ;;  %s736_s7 = sshll.u32 (!%p173_p10), %s200_s6, 8  ;;  %s778_s11 = sshll.u32 (!%p173_p10), %s991_s15, 12 }
  0x11   : > { %s1164_s10 = scalar_lea.vmem (!%p173_p10), [#allocation2], %s736_s7  ;;  %s1225_s21 = scalar_lea.hbm (!%p173_p10), %s1286_s3, %s778_s11 }
  0x12   : > { %s630_s18 = sshll.u32 (!%p173_p10), %s1164_s10, 4  ;;  %s1237_s23 = scalar_lea.sflag (!%p173_p10), [#allocation3], %s200_s6  ;;  %s1227_s18 = int_to_ptr.vmem [resolvable:$true] %s630_s18 }
  0x13   : > { %s921_s26 = scalar_lea.vmem (!%p173_p10), %s1227_s18, 4096  ;;  %s1001_s27 = smov (!%p173_p10), [#allocation2]  }
  0x14   : > { %p922_p12 = scmp.ne.s32.totalorder (!%p173_p10), %s1227_s18, %s921_s26 }
  0x16   : > { %s1297_s28 = smov (!%p204_p11, %s737_s28), 63  ;;  %p923_p13 = pnand %p922_p12, %p1064_p4 }
  0x17   : > { %s738_s29 = sshll.u32 %s1297_s28, 3  ;;  %s925_s28 = sshll.u32 %s1001_s27, 4  ;;  %s926_s28 = int_to_ptr.vmem [resolvable:$false] %s925_s28 }
  0x18   : > { %s1086_s5 = scalar_lea.vmem %s1283_s0, %s738_s29  ;;  %p924_p0 = pneg %p923_p13 }
  0x19   : > { %v217_v1 = vld [vmem:[%s1086_s5] sm:$0xff]  ;;  %v218_v3 = vld [vmem:[%s1086_s5 + $0x8] sm:$0xff]  ;;  %v219_v5 = vld [vmem:[%s1086_s5 + $0x10] sm:$0xff]  ;;  %s927_s29 = scalar_lea.vmem %s926_s28, 8192  ;;  %p928_p1 = scmp.lt.s32.totalorder %s1227_s18, %s926_s28 }
  0x1a   : > { %v233_v2 = vld [vmem:[%s1086_s5 + $0x80] sm:$0xff]  ;;  %814 = vmatprep.mubr.msk.f32.mxu0 %vm257_vm1, %v217_v1  ;;  %v234_v4 = vld [vmem:[%s1086_s5 + $0x88] sm:$0xff]  ;;  %v235_v6 = vld [vmem:[%s1086_s5 + $0x90] sm:$0xff]  ;;  %p929_p2 = scmp.lt.s32.totalorder %s927_s29, %s921_s26 }
  0x1b   : > { %838 = vmatprep.mubr.msk.f32.mxu1 %vm257_vm1, %v233_v2  ;;  %815 = vmatmul.mubr.msk.f32.vlgmr.msra.gmra.mrb[0].mxu0 %vm257_vm1, %v218_v3  ;;  %v220_v7 = vld [vmem:[%s1086_s5 + $0x18] sm:$0xff]  ;;  %v221_v9 = vld [vmem:[%s1086_s5 + $0x20] sm:$0xff]  ;;  %v222_v11 = vld [vmem:[%s1086_s5 + $0x28] sm:$0xff] }
  0x1c   : > { %839 = vmatmul.mubr.msk.f32.vlgmr.msra.gmra.mrb[0].mxu1 %vm257_vm1, %v234_v4  ;;  %817 = vmatprep.mubr.msk.f32.mxu0 %vm257_vm1, %v219_v5  ;;  %v236_v8 = vld [vmem:[%s1086_s5 + $0x98] sm:$0xff]  ;;  %v237_v10 = vld [vmem:[%s1086_s5 + $0xa0] sm:$0xff]  ;;  %v238_v12 = vld [vmem:[%s1086_s5 + $0xa8] sm:$0xff]  ;;  %p930_p3 = por %p929_p2, %p928_p1 }
  0x1d   : > { %841 = vmatprep.mubr.msk.f32.mxu1 %vm257_vm1, %v235_v6  ;;  %v223_v13 = vld [vmem:[%s1086_s5 + $0x30] sm:$0xff]  ;;  %v224_v15 = vld [vmem:[%s1086_s5 + $0x38] sm:$0xff]  ;;  %v225_v17 = vld [vmem:[%s1086_s5 + $0x40] sm:$0xff] }
  0x1e   : > { %v239_v14 = vld [vmem:[%s1086_s5 + $0xb0] sm:$0xff]  ;;  %v240_v16 = vld [vmem:[%s1086_s5 + $0xb8] sm:$0xff]  ;;  %v241_v18 = vld [vmem:[%s1086_s5 + $0xc0] sm:$0xff]  ;;  %p931_p5 = pnand %p930_p3, %p924_p0 }
  0x1f   : > { %818 = vmatmul.mubr.msk.f32.gmra.mrb[2].mxu0 %vm257_vm1, %v220_v7  ;;  %v226_v19 = vld [vmem:[%s1086_s5 + $0x48] sm:$0xff]  ;;  %v227_v21 = vld [vmem:[%s1086_s5 + $0x50] sm:$0xff]  ;;  %v228_v23 = vld [vmem:[%s1086_s5 + $0x58] sm:$0xff] }
  0x20   : > { %842 = vmatmul.mubr.msk.f32.gmra.mrb[2].mxu1 %vm257_vm1, %v236_v8  ;;  %820 = vmatprep.mubr.msk.f32.mxu0 %vm257_vm1, %v221_v9  ;;  %v242_v20 = vld [vmem:[%s1086_s5 + $0xc8] sm:$0xff]  ;;  %v243_v22 = vld [vmem:[%s1086_s5 + $0xd0] sm:$0xff]  ;;  %v244_v24 = vld [vmem:[%s1086_s5 + $0xd8] sm:$0xff] }
  0x21   : > { %844 = vmatprep.mubr.msk.f32.mxu1 %vm257_vm1, %v237_v10  ;;  %v229_v25 = vld [vmem:[%s1086_s5 + $0x60] sm:$0xff]  ;;  %v230_v27 = vld [vmem:[%s1086_s5 + $0x68] sm:$0xff]  ;;  %v231_v29 = vld [vmem:[%s1086_s5 + $0x70] sm:$0xff] }
  0x22   : > { %v245_v26 = vld [vmem:[%s1086_s5 + $0xe0] sm:$0xff]  ;;  %v246_v28 = vld [vmem:[%s1086_s5 + $0xe8] sm:$0xff]  ;;  %v247_v30 = vld [vmem:[%s1086_s5 + $0xf0] sm:$0xff] }
  0x23   : > { %821 = vmatmul.mubr.msk.f32.gmra.mrb[4].mxu0 %vm257_vm1, %v222_v11  ;;  %v232_v31 = vld [vmem:[%s1086_s5 + $0x78] sm:$0xff] }
  0x24   : > { %845 = vmatmul.mubr.msk.f32.gmra.mrb[4].mxu1 %vm257_vm1, %v238_v12  ;;  %823 = vmatprep.mubr.msk.f32.mxu0 %vm257_vm1, %v223_v13  ;;  %v248_v32 = vld [vmem:[%s1086_s5 + $0xf8] sm:$0xff] }
  0x25   : > { %847 = vmatprep.mubr.msk.f32.mxu1 %vm257_vm1, %v239_v14 }
  0x27   : > { %824 = vmatmul.mubr.msk.f32.gmra.mrb[6].mxu0 %vm257_vm1, %v224_v15 }
  0x28   : > { %848 = vmatmul.mubr.msk.f32.gmra.mrb[6].mxu1 %vm257_vm1, %v240_v16  ;;  %826 = vmatprep.mubr.msk.f32.mxu0 %vm257_vm1, %v225_v17 }
  0x29   : > { %850 = vmatprep.mubr.msk.f32.mxu1 %vm257_vm1, %v241_v18 }
  0x2b   : > { %827 = vmatmul.mubr.msk.f32.gmra.mrb[8].mxu0 %vm257_vm1, %v226_v19 }
  0x2c   : > { %851 = vmatmul.mubr.msk.f32.gmra.mrb[8].mxu1 %vm257_vm1, %v242_v20  ;;  %829 = vmatprep.mubr.msk.f32.mxu0 %vm257_vm1, %v227_v21 }
  0x2d   : > { %853 = vmatprep.mubr.msk.f32.mxu1 %vm257_vm1, %v243_v22 }
  0x2f   : > { %830 = vmatmul.mubr.msk.f32.gmra.mrb[10].mxu0 %vm257_vm1, %v228_v23 }
  0x30   : > { %854 = vmatmul.mubr.msk.f32.gmra.mrb[10].mxu1 %vm257_vm1, %v244_v24  ;;  %832 = vmatprep.mubr.msk.f32.mxu0 %vm257_vm1, %v229_v25 }
  0x31   : > { %856 = vmatprep.mubr.msk.f32.mxu1 %vm257_vm1, %v245_v26 }
  0x33   : > { %833 = vmatmul.mubr.msk.f32.gmra.mrb[12].mxu0 %vm257_vm1, %v230_v27 }
  0x34   : > { %857 = vmatmul.mubr.msk.f32.gmra.mrb[12].mxu1 %vm257_vm1, %v246_v28  ;;  %835 = vmatprep.mubr.msk.f32.mxu0 %vm257_vm1, %v231_v29 }
  0x35   : > { %859 = vmatprep.mubr.msk.f32.mxu1 %vm257_vm1, %v247_v30 }
  0x37   : > { %836 = vmatmul.mubr.msk.f32.gmra.mrb[14].mxu0 %vm257_vm1, %v232_v31 }
  0x38   : > { %860 = vmatmul.mubr.msk.f32.gmra.mrb[14].mxu1 %vm257_vm1, %v248_v32 }
  0xee   : > { %v816_v34 = vpop.f32.mrb[0].mxu0 }
  0xef   : > { %v840_v35 = vpop.f32.mrb[0].mxu1  ;;  %v430_v36 = vadd.f32 %v816_v34, %v1158_v33  ;;  %v424_v38 = vpop.f32.mrb[1].mxu0 }
  0xf0   : > { %v510_v37 = vadd.f32 %v840_v35, %v1158_v33  ;;  %v504_v39 = vpop.f32.mrb[1].mxu1  ;;  %v425_v40 = vadd.f32 %v1158_v33, %v424_v38 }
  0xf1   : > { %v505_v41 = vadd.f32 %v1158_v33, %v504_v39  ;;  %584 = vst [vmem:[%s1164_s10 + $0x8] sm:$0xff] %v430_v36 }
  0xf2   : > { %600 = vst [vmem:[%s1164_s10 + $0x88] sm:$0xff] %v510_v37  ;;  %583 = vst [vmem:[%s1164_s10] sm:$0xff] %v425_v40  ;;  %v819_v42 = vpop.f32.mrb[2].mxu0 }
  0xf3   : > { %599 = vst [vmem:[%s1164_s10 + $0x80] sm:$0xff] %v505_v41  ;;  %v843_v43 = vpop.f32.mrb[2].mxu1  ;;  %v440_v44 = vadd.f32 %v819_v42, %v1158_v33  ;;  %v434_v46 = vpop.f32.mrb[3].mxu0 }
  0xf4   : > { %v520_v45 = vadd.f32 %v843_v43, %v1158_v33  ;;  %v514_v47 = vpop.f32.mrb[3].mxu1  ;;  %v435_v48 = vadd.f32 %v1158_v33, %v434_v46 }
  0xf5   : > { %v515_v49 = vadd.f32 %v1158_v33, %v514_v47  ;;  %586 = vst [vmem:[%s1164_s10 + $0x18] sm:$0xff] %v440_v44 }
  0xf6   : > { %602 = vst [vmem:[%s1164_s10 + $0x98] sm:$0xff] %v520_v45  ;;  %585 = vst [vmem:[%s1164_s10 + $0x10] sm:$0xff] %v435_v48  ;;  %v822_v50 = vpop.f32.mrb[4].mxu0 }
  0xf7   : > { %601 = vst [vmem:[%s1164_s10 + $0x90] sm:$0xff] %v515_v49  ;;  %v846_v51 = vpop.f32.mrb[4].mxu1  ;;  %v450_v52 = vadd.f32 %v822_v50, %v1158_v33  ;;  %v444_v54 = vpop.f32.mrb[5].mxu0 }
  0xf8   : > { %v530_v53 = vadd.f32 %v846_v51, %v1158_v33  ;;  %v524_v55 = vpop.f32.mrb[5].mxu1  ;;  %v445_v56 = vadd.f32 %v1158_v33, %v444_v54 }
  0xf9   : > { %v525_v57 = vadd.f32 %v1158_v33, %v524_v55  ;;  %588 = vst [vmem:[%s1164_s10 + $0x28] sm:$0xff] %v450_v52 }
  0xfa   : > { %604 = vst [vmem:[%s1164_s10 + $0xa8] sm:$0xff] %v530_v53  ;;  %587 = vst [vmem:[%s1164_s10 + $0x20] sm:$0xff] %v445_v56  ;;  %v825_v58 = vpop.f32.mrb[6].mxu0 }
  0xfb   : > { %603 = vst [vmem:[%s1164_s10 + $0xa0] sm:$0xff] %v525_v57  ;;  %v849_v59 = vpop.f32.mrb[6].mxu1  ;;  %v460_v60 = vadd.f32 %v825_v58, %v1158_v33  ;;  %v454_v62 = vpop.f32.mrb[7].mxu0 }
  0xfc   : > { %v540_v61 = vadd.f32 %v849_v59, %v1158_v33  ;;  %v534_v63 = vpop.f32.mrb[7].mxu1  ;;  %v455_v0 = vadd.f32 %v1158_v33, %v454_v62 }
  0xfd   : > { %v535_v1 = vadd.f32 %v1158_v33, %v534_v63  ;;  %590 = vst [vmem:[%s1164_s10 + $0x38] sm:$0xff] %v460_v60 }
  0xfe   : > { %606 = vst [vmem:[%s1164_s10 + $0xb8] sm:$0xff] %v540_v61  ;;  %589 = vst [vmem:[%s1164_s10 + $0x30] sm:$0xff] %v455_v0  ;;  %v828_v2 = vpop.f32.mrb[8].mxu0 }
  0xff   : > { %605 = vst [vmem:[%s1164_s10 + $0xb0] sm:$0xff] %v535_v1  ;;  %v852_v3 = vpop.f32.mrb[8].mxu1  ;;  %v470_v4 = vadd.f32 %v828_v2, %v1158_v33  ;;  %v464_v6 = vpop.f32.mrb[9].mxu0 }
 0x100   : > { %v550_v5 = vadd.f32 %v852_v3, %v1158_v33  ;;  %v544_v7 = vpop.f32.mrb[9].mxu1  ;;  %v465_v8 = vadd.f32 %v1158_v33, %v464_v6 }
 0x101   : > { %v545_v9 = vadd.f32 %v1158_v33, %v544_v7  ;;  %592 = vst [vmem:[%s1164_s10 + $0x48] sm:$0xff] %v470_v4 }
 0x102   : > { %608 = vst [vmem:[%s1164_s10 + $0xc8] sm:$0xff] %v550_v5  ;;  %591 = vst [vmem:[%s1164_s10 + $0x40] sm:$0xff] %v465_v8  ;;  %v831_v10 = vpop.f32.mrb[10].mxu0 }
 0x103   : > { %607 = vst [vmem:[%s1164_s10 + $0xc0] sm:$0xff] %v545_v9  ;;  %v855_v11 = vpop.f32.mrb[10].mxu1  ;;  %v480_v12 = vadd.f32 %v831_v10, %v1158_v33  ;;  %v474_v14 = vpop.f32.mrb[11].mxu0 }
 0x104   : > { %v560_v13 = vadd.f32 %v855_v11, %v1158_v33  ;;  %v554_v15 = vpop.f32.mrb[11].mxu1  ;;  %v475_v16 = vadd.f32 %v1158_v33, %v474_v14 }
 0x105   : > { %v555_v17 = vadd.f32 %v1158_v33, %v554_v15  ;;  %594 = vst [vmem:[%s1164_s10 + $0x58] sm:$0xff] %v480_v12 }
 0x106   : > { %610 = vst [vmem:[%s1164_s10 + $0xd8] sm:$0xff] %v560_v13  ;;  %593 = vst [vmem:[%s1164_s10 + $0x50] sm:$0xff] %v475_v16  ;;  %v834_v18 = vpop.f32.mrb[12].mxu0 }
 0x107   : > { %609 = vst [vmem:[%s1164_s10 + $0xd0] sm:$0xff] %v555_v17  ;;  %v858_v19 = vpop.f32.mrb[12].mxu1  ;;  %v490_v20 = vadd.f32 %v834_v18, %v1158_v33  ;;  %v484_v22 = vpop.f32.mrb[13].mxu0 }
 0x108   : > { %v570_v21 = vadd.f32 %v858_v19, %v1158_v33  ;;  %v564_v23 = vpop.f32.mrb[13].mxu1  ;;  %v485_v24 = vadd.f32 %v1158_v33, %v484_v22 }
 0x109   : > { %v565_v25 = vadd.f32 %v1158_v33, %v564_v23  ;;  %596 = vst [vmem:[%s1164_s10 + $0x68] sm:$0xff] %v490_v20 }
 0x10a   : > { %612 = vst [vmem:[%s1164_s10 + $0xe8] sm:$0xff] %v570_v21  ;;  %595 = vst [vmem:[%s1164_s10 + $0x60] sm:$0xff] %v485_v24  ;;  %v837_v26 = vpop.f32.mrb[14].mxu0 }
 0x10b   : > { %611 = vst [vmem:[%s1164_s10 + $0xe0] sm:$0xff] %v565_v25  ;;  %v861_v27 = vpop.f32.mrb[14].mxu1  ;;  %v500_v28 = vadd.f32 %v837_v26, %v1158_v33  ;;  %v494_v30 = vpop.f32.mrb[15].mxu0 }
 0x10c   : > { %v580_v29 = vadd.f32 %v861_v27, %v1158_v33  ;;  %v574_v31 = vpop.f32.mrb[15].mxu1  ;;  %v495_v32 = vadd.f32 %v1158_v33, %v494_v30 }
 0x10d   : > { %v575_v34 = vadd.f32 %v1158_v33, %v574_v31  ;;  %598 = vst [vmem:[%s1164_s10 + $0x78] sm:$0xff] %v500_v28 }
 0x10e   : > { %614 = vst [vmem:[%s1164_s10 + $0xf8] sm:$0xff] %v580_v29  ;;  %597 = vst [vmem:[%s1164_s10 + $0x70] sm:$0xff] %v495_v32 }
 0x10f   : > { %613 = vst [vmem:[%s1164_s10 + $0xf0] sm:$0xff] %v575_v34 }
 0x110   : > { %934 = shalt.err (!%p931_p5)
}
 0x111   : > { %s935_s30 = scalar_lea.hbm %s1225_s21, 4096  ;;  %s939_s6 = scalar_lea.hbm %s1286_s3, 8192 }
 0x112   : > { %p936_p6 = scmp.ne.s32.totalorder %s1225_s21, %s935_s30  ;;  %p940_p10 = scmp.lt.u32.totalorder %s1225_s21, %s1286_s3 }
 0x113   : > { %p941_p11 = scmp.lt.u32.totalorder %s939_s6, %s935_s30  ;;  %p943_p13 = scmp.lt.u32.totalorder %s935_s30, %s1225_s21 }
 0x114   : > { %p937_p7 = pnand %p936_p6, %p1064_p4 }
 0x115   : > { %p942_p12 = por %p941_p11, %p940_p10 }
 0x116   : > { %p938_p9 = pneg %p937_p7 }
 0x117   : > { %p944_p0 = por %p943_p13, %p942_p12 }
 0x119   : > { %p945_p1 = pnand %p944_p0, %p938_p9 }
 0x11b   : > { %948 = shalt.err (!%p945_p1)
}
 0x11c   : > { %s1002_s9 = smov 128   ;;  %s1003_s10 = smov 8  }
 0x11d   : > { %864 = dma.vmem_to_hbm [thread:$0]  (%p1064_p4), %s1227_s18, 4096, %s1225_s21, %s1237_s23, %s1002_s9, %s1002_s9, %s1003_s10  }
 0x11e PF: > { %p870_p2 = scmp.ge.s32.totalorder %s999_s17, 2  ;;  %s645_s11 = sand.u32 1, %s979_s12  }
 0x11f   : > { %s646_s15 = scalar_lea.sflag [#allocation3], %s645_s11 }
 0x120   : > { %p867_p3 = pnand %p870_p2, %p1071_p8 }
 0x122   : > { %974 = dma.done.wait (!%p867_p3), %s646_s15, 4096  }
 0x123   : > { %976 = vsyncadd (!%p867_p3), %s646_s15, 4294963200  ;;  %s16_s17 = sadd.s32 1, %s999_s17   ;;  %s1289_s12 = smov %s983_s13 }
 0x124   : > { %p13_p5 = scmp.ge.s32.totalorder %s16_s17, 4   ;;  %s1290_s13 = smov %s987_s14 }
 0x125   : > { %s1291_s14 = smov %s1077_s25  ;;  %s1292_s15 = smov %s995_s16 }
 0x126   : > { %s1293_s16 = smov %s1295_s20  ;;  %15 = sbr.rel (!%p13_p5) target bundleno = 4 (0x4), region = 73 }
 0x12d   :  { %651 = vsyncpa [#allocation3], 1 }
 0x12e   :  { %653 = vsyncpa [#allocation3 + $0x1], 1 }

</bundles_post_ra>
